<compile_context>
chip_gen: v6e
topology: v6e:2x2x1
jax: 0.10.0
libtpu: 0.0.40
codegen_flags: <defaults>
</compile_context>

<pallas_src>
import functools

import jax
import jax.numpy as jnp
from jax.experimental import pallas as pl
from jax.experimental.pallas import tpu as pltpu


def generator_kernel(z_ref, w1_ref, b1_ref, w2_ref, b2_ref, w3_ref, b3_ref,
                     out_ref):
    # Layer 1: bf16 MXU matmul (K = z_dim, unpadded) with f32 accumulation.
    z = z_ref[...].astype(jnp.bfloat16)
    h1 = jnp.dot(z, w1_ref[...], preferred_element_type=jnp.float32)
    h1 = jnp.maximum(h1 + b1_ref[...], 0.0)

    # Layer 2.
    h2 = jnp.dot(h1.astype(jnp.bfloat16), w2_ref[...],
                 preferred_element_type=jnp.float32)
    h2 = jnp.maximum(h2 + b2_ref[...], 0.0)

    # Layer 3: output written at true width (out_dim); bias add in f32.
    out = jnp.dot(h2.astype(jnp.bfloat16), w3_ref[...],
                  preferred_element_type=jnp.float32)
    out_ref[...] = (out + b3_ref[...]).astype(out_ref.dtype)


def _choose_batch_tile(B, block_b):
    """Pick the batch tile: single step for small B; >= 4 steps for large B."""
    if B <= block_b:
        return B  # block second-to-last dim == full array dim -> always legal.
    bb = max(8, block_b - block_b % 8)   # keep sublane (8) divisibility
    n_steps = -(-B // bb)
    # v7x has 2 TensorCores: want >= 2 steps per core (>= 4 total) on large
    # batches so DMA / compute pipeline across steps, while keeping bb >= 512
    # so the ~0.35 us per-step overhead stays amortized.
    if B >= 2048:
        while n_steps < 4 and bb > 512:
            bb //= 2
            n_steps = -(-B // bb)
    return bb


def prepare_params(w1, b1, w2, b2, w3, b3):
    """One-time param prep (outside the jitted forward): bf16 weights stored as
    (in_features, out_features); f32 biases as (1, out_features) rows."""
    bf16, f32 = jnp.bfloat16, jnp.float32
    return (w1.astype(bf16), b1.reshape(1, -1).astype(f32),
            w2.astype(bf16), b2.reshape(1, -1).astype(f32),
            w3.astype(bf16), b3.reshape(1, -1).astype(f32))


@functools.partial(jax.jit, static_argnames=("block_b",))
def generator_forward(z, w1, b1, w2, b2, w3, b3, *, block_b=1024):
    B, z_dim = z.shape
    h1_dim = w1.shape[1]
    h2_dim = w2.shape[1]
    out_dim = w3.shape[1]

    bb = _choose_batch_tile(B, block_b)
    n_steps = -(-B // bb)
    bp = n_steps * bb

    # Only the batch rows are padded (when the tile doesn't divide B); feature
    # dims are left unpadded — BlockSpec dims equal to the full array dims are
    # legal, and Mosaic handles the internal lane/sublane padding in VMEM.
    z_in = z if bp == B else jnp.pad(z, ((0, bp - B), (0, 0)))

    # Weights/biases are tiny and fully VMEM-resident (constant index_map =>
    # no per-step re-fetch); only the batch axis is tiled.
    in_specs = [
        pl.BlockSpec((bb, z_dim), lambda i: (i, 0)),       # z tile (f32)
        pl.BlockSpec((z_dim, h1_dim), lambda i: (0, 0)),   # w1 (bf16)
        pl.BlockSpec((1, h1_dim), lambda i: (0, 0)),       # b1 (f32)
        pl.BlockSpec((h1_dim, h2_dim), lambda i: (0, 0)),  # w2 (bf16)
        pl.BlockSpec((1, h2_dim), lambda i: (0, 0)),       # b2 (f32)
        pl.BlockSpec((h2_dim, out_dim), lambda i: (0, 0)), # w3 (bf16)
        pl.BlockSpec((1, out_dim), lambda i: (0, 0)),      # b3 (f32)
    ]
    out_specs = pl.BlockSpec((bb, out_dim), lambda i: (i, 0))

    flops = 2 * bp * (z_dim * h1_dim + h1_dim * h2_dim + h2_dim * out_dim)
    bytes_accessed = (
        bp * z_dim * 4
        + (w1.size + w2.size + w3.size) * 2
        + (b1.size + b2.size + b3.size) * 4
        + bp * out_dim * 4)

    out_p = pl.pallas_call(
        generator_kernel,
        out_shape=jax.ShapeDtypeStruct((bp, out_dim), jnp.float32),
        grid_spec=pltpu.PrefetchScalarGridSpec(
            num_scalar_prefetch=0,
            grid=(n_steps,),
            in_specs=in_specs,
            out_specs=out_specs,
        ),
        compiler_params=pltpu.CompilerParams(
            dimension_semantics=("parallel",)),
        cost_estimate=pl.CostEstimate(
            flops=flops, transcendentals=0, bytes_accessed=bytes_accessed),
    )(z_in, w1, b1, w2, b2, w3, b3)

    return out_p if bp == B else out_p[:B]


def init_linear_params(key, in_dim, out_dim):
    """Deterministic init mimicking nn.Linear's U(-1/sqrt(in), 1/sqrt(in))."""
    k_w, k_b = jax.random.split(key)
    bound = 1.0 / jnp.sqrt(jnp.float32(in_dim))
    # Stored as (in_dim, out_dim): already transposed relative to PyTorch.
    w = jax.random.uniform(k_w, (in_dim, out_dim), jnp.float32, -bound, bound)
    b = jax.random.uniform(k_b, (out_dim,), jnp.float32, -bound, bound)
    return w, b


def reference_forward(z, w1, b1, w2, b2, w3, b3):
    """Pure-JAX reference with the same bf16-in / f32-accumulate math."""
    bf16 = jnp.bfloat16
    h1 = jnp.dot(z.astype(bf16), w1.astype(bf16),
                 preferred_element_type=jnp.float32) + b1.reshape(1, -1)
    h1 = jnp.maximum(h1, 0.0)
    h2 = jnp.dot(h1.astype(bf16), w2.astype(bf16),
                 preferred_element_type=jnp.float32) + b2.reshape(1, -1)
    h2 = jnp.maximum(h2, 0.0)
    return jnp.dot(h2.astype(bf16), w3.astype(bf16),
                   preferred_element_type=jnp.float32) + b3.reshape(1, -1)


if __name__ == "__main__":
    z_dim = 10
    output_dim = 32
    batch = 16

    root = jax.random.PRNGKey(0)
    k_z, k1, k2, k3 = jax.random.split(root, 4)

    z = jax.random.normal(k_z, (batch, z_dim), jnp.float32)
    w1, b1 = init_linear_params(k1, z_dim, 128)
    w2, b2 = init_linear_params(k2, 128, 256)
    w3, b3 = init_linear_params(k3, 256, output_dim)

    params = prepare_params(w1, b1, w2, b2, w3, b3)

    # Small-batch path: single grid step, no padding/slicing.
    out = generator_forward(z, *params, block_b=1024)
    out = jax.block_until_ready(out)
    ref = reference_forward(z, w1, b1, w2, b2, w3, b3)
    assert out.shape == (batch, output_dim)
    assert jnp.allclose(out, ref, atol=2e-3, rtol=2e-3), \
        float(jnp.max(jnp.abs(out - ref)))

    # Multi-step path with a ragged tail: exercises batch-row padding + slice.
    batch2 = 40
    z2 = jax.random.normal(jax.random.PRNGKey(1), (batch2, z_dim), jnp.float32)
    out2 = generator_forward(z2, *params, block_b=16)
    out2 = jax.block_until_ready(out2)
    ref2 = reference_forward(z2, w1, b1, w2, b2, w3, b3)
    assert out2.shape == (batch2, output_dim)
    assert jnp.allclose(out2, ref2, atol=2e-3, rtol=2e-3), \
        float(jnp.max(jnp.abs(out2 - ref2)))

    print("KERNEL_OK")
</pallas_src>

<mosaic_0001>
module attributes {stable_mosaic.version = 11 : i64} {
  func.func @generator_kernel(%arg0: i32, %arg1: memref<16x10xf32, #tpu.memory_space<vmem>>, %arg2: memref<10x128xbf16, #tpu.memory_space<vmem>>, %arg3: memref<1x128xf32, #tpu.memory_space<vmem>>, %arg4: memref<128x256xbf16, #tpu.memory_space<vmem>>, %arg5: memref<1x256xf32, #tpu.memory_space<vmem>>, %arg6: memref<256x32xbf16, #tpu.memory_space<vmem>>, %arg7: memref<1x32xf32, #tpu.memory_space<vmem>>, %arg8: memref<16x32xf32, #tpu.memory_space<vmem>>) attributes {dimension_semantics = [#tpu.dimension_semantics<parallel>], iteration_bounds = array<i64: 1>, scalar_prefetch = 0 : i64, scratch_operands = 0 : i64, tpu.core_type = #tpu.core_type<tc>, window_params = [{transform_indices = @transform_0, window_bounds = array<i64: 16, 10>}, {pipeline_mode = #tpu.pipeline_mode<synchronous>, transform_indices = @transform_1, window_bounds = array<i64: 10, 128>}, {pipeline_mode = #tpu.pipeline_mode<synchronous>, transform_indices = @transform_2, window_bounds = array<i64: 1, 128>}, {pipeline_mode = #tpu.pipeline_mode<synchronous>, transform_indices = @transform_3, window_bounds = array<i64: 128, 256>}, {pipeline_mode = #tpu.pipeline_mode<synchronous>, transform_indices = @transform_4, window_bounds = array<i64: 1, 256>}, {pipeline_mode = #tpu.pipeline_mode<synchronous>, transform_indices = @transform_5, window_bounds = array<i64: 256, 32>}, {pipeline_mode = #tpu.pipeline_mode<synchronous>, transform_indices = @transform_6, window_bounds = array<i64: 1, 32>}, {transform_indices = @transform_7, window_bounds = array<i64: 16, 32>}]} {
    %c0 = arith.constant 0 : index
    %c0_0 = arith.constant 0 : index
    %0 = vector.load %arg1[%c0, %c0_0] : memref<16x10xf32, #tpu.memory_space<vmem>>, vector<16x10xf32>
    %1 = arith.truncf %0 : vector<16x10xf32> to vector<16x10xbf16>
    %c0_1 = arith.constant 0 : index
    %c0_2 = arith.constant 0 : index
    %2 = vector.load %arg2[%c0_1, %c0_2] : memref<10x128xbf16, #tpu.memory_space<vmem>>, vector<10x128xbf16>
    %cst = arith.constant dense<0.000000e+00> : vector<16x128xf32>
    %3 = tpu.matmul %1, %2, %cst {dimension_numbers = #tpu.dot_dimension_numbers<[1], [0], [0], [1], [0, 0, 1, 1], [], []>} : vector<16x10xbf16>, vector<10x128xbf16>, vector<16x128xf32> -> vector<16x128xf32>
    %c0_3 = arith.constant 0 : index
    %c0_4 = arith.constant 0 : index
    %4 = vector.load %arg3[%c0_3, %c0_4] : memref<1x128xf32, #tpu.memory_space<vmem>>, vector<1x128xf32>
    %5 = vector.broadcast %4 : vector<1x128xf32> to vector<16x128xf32>
    %6 = arith.addf %3, %5 : vector<16x128xf32>
    %cst_5 = arith.constant 0.000000e+00 : f32
    %7 = vector.broadcast %cst_5 : f32 to vector<16x128xf32>
    %8 = arith.maximumf %6, %7 : vector<16x128xf32>
    %9 = arith.truncf %8 : vector<16x128xf32> to vector<16x128xbf16>
    %c0_6 = arith.constant 0 : index
    %c0_7 = arith.constant 0 : index
    %10 = vector.load %arg4[%c0_6, %c0_7] : memref<128x256xbf16, #tpu.memory_space<vmem>>, vector<128x256xbf16>
    %cst_8 = arith.constant dense<0.000000e+00> : vector<16x256xf32>
    %11 = tpu.matmul %9, %10, %cst_8 {dimension_numbers = #tpu.dot_dimension_numbers<[1], [0], [0], [1], [0, 0, 1, 1], [], []>} : vector<16x128xbf16>, vector<128x256xbf16>, vector<16x256xf32> -> vector<16x256xf32>
    %c0_9 = arith.constant 0 : index
    %c0_10 = arith.constant 0 : index
    %12 = vector.load %arg5[%c0_9, %c0_10] : memref<1x256xf32, #tpu.memory_space<vmem>>, vector<1x256xf32>
    %13 = vector.broadcast %12 : vector<1x256xf32> to vector<16x256xf32>
    %14 = arith.addf %11, %13 : vector<16x256xf32>
    %cst_11 = arith.constant 0.000000e+00 : f32
    %15 = vector.broadcast %cst_11 : f32 to vector<16x256xf32>
    %16 = arith.maximumf %14, %15 : vector<16x256xf32>
    %17 = arith.truncf %16 : vector<16x256xf32> to vector<16x256xbf16>
    %c0_12 = arith.constant 0 : index
    %c0_13 = arith.constant 0 : index
    %18 = vector.load %arg6[%c0_12, %c0_13] : memref<256x32xbf16, #tpu.memory_space<vmem>>, vector<256x32xbf16>
    %cst_14 = arith.constant dense<0.000000e+00> : vector<16x32xf32>
    %19 = tpu.matmul %17, %18, %cst_14 {dimension_numbers = #tpu.dot_dimension_numbers<[1], [0], [0], [1], [0, 0, 1, 1], [], []>} : vector<16x256xbf16>, vector<256x32xbf16>, vector<16x32xf32> -> vector<16x32xf32>
    %c0_15 = arith.constant 0 : index
    %c0_16 = arith.constant 0 : index
    %20 = vector.load %arg7[%c0_15, %c0_16] : memref<1x32xf32, #tpu.memory_space<vmem>>, vector<1x32xf32>
    %21 = vector.broadcast %20 : vector<1x32xf32> to vector<16x32xf32>
    %22 = arith.addf %19, %21 : vector<16x32xf32>
    %c0_17 = arith.constant 0 : index
    %c0_18 = arith.constant 0 : index
    %23 = vector.load %arg8[%c0_17, %c0_18] : memref<16x32xf32, #tpu.memory_space<vmem>>, vector<16x32xf32>
    tpu.vector_store %arg8[%c0_17, %c0_18], %22 {strides = array<i32>} : memref<16x32xf32, #tpu.memory_space<vmem>>, vector<16x32xf32>,
    return
  }
  func.func @transform_0(%arg0: i32) -> (i32, i32) {
    %c0_i32 = arith.constant 0 : i32
    %c0_i32_0 = arith.constant 0 : i32
    return %arg0, %c0_i32 : i32, i32
  }
  func.func @transform_1(%arg0: i32) -> (i32, i32) {
    %c0_i32 = arith.constant 0 : i32
    %c0_i32_0 = arith.constant 0 : i32
    %c0_i32_1 = arith.constant 0 : i32
    return %c0_i32, %c0_i32_0 : i32, i32
  }
  func.func @transform_2(%arg0: i32) -> (i32, i32) {
    %c0_i32 = arith.constant 0 : i32
    %c0_i32_0 = arith.constant 0 : i32
    %c0_i32_1 = arith.constant 0 : i32
    return %c0_i32, %c0_i32_0 : i32, i32
  }
  func.func @transform_3(%arg0: i32) -> (i32, i32) {
    %c0_i32 = arith.constant 0 : i32
    %c0_i32_0 = arith.constant 0 : i32
    %c0_i32_1 = arith.constant 0 : i32
    return %c0_i32, %c0_i32_0 : i32, i32
  }
  func.func @transform_4(%arg0: i32) -> (i32, i32) {
    %c0_i32 = arith.constant 0 : i32
    %c0_i32_0 = arith.constant 0 : i32
    %c0_i32_1 = arith.constant 0 : i32
    return %c0_i32, %c0_i32_0 : i32, i32
  }
  func.func @transform_5(%arg0: i32) -> (i32, i32) {
    %c0_i32 = arith.constant 0 : i32
    %c0_i32_0 = arith.constant 0 : i32
    %c0_i32_1 = arith.constant 0 : i32
    return %c0_i32, %c0_i32_0 : i32, i32
  }
  func.func @transform_6(%arg0: i32) -> (i32, i32) {
    %c0_i32 = arith.constant 0 : i32
    %c0_i32_0 = arith.constant 0 : i32
    %c0_i32_1 = arith.constant 0 : i32
    return %c0_i32, %c0_i32_0 : i32, i32
  }
  func.func @transform_7(%arg0: i32) -> (i32, i32) {
    %c0_i32 = arith.constant 0 : i32
    %c0_i32_0 = arith.constant 0 : i32
    return %arg0, %c0_i32 : i32, i32
  }
}

</mosaic_0001>

<bundles_post_ra>
// kernel: generator_forward.1
= control target key start
LH: loop header
LB: loop body
LE: loop exit
PB: predicated region body
PF: predicated region fallthrough
CT: control target
= control target key end

     0   :  { %vm49_vm0 = vcmask 1044480   ;;  %v584_v0 = vmov 0.0   ;;  %vm585_vm1 = vmmov 0   ;;  %vm45_vm2 = vcmask 80896   ;;  %s747_s0 = inlined_call_operand.vmem [shape: f32[16,10], index: 0, kind: input, shape index: {}]   ;;  %s748_s1 = inlined_call_operand.vmem [shape: bf16[10,128], index: 1, kind: input, shape index: {}]   ;;  %s749_s2 = inlined_call_operand.vmem [shape: f32[1,128], index: 2, kind: input, shape index: {}]   ;;  %s750_s3 = inlined_call_operand.vmem [shape: bf16[128,256], index: 3, kind: input, shape index: {}]   ;;  %s751_s4 = inlined_call_operand.vmem [shape: f32[1,256], index: 4, kind: input, shape index: {}]   ;;  %s752_s5 = inlined_call_operand.vmem [shape: bf16[256,32], index: 5, kind: input, shape index: {}]   ;;  %s753_s6 = inlined_call_operand.vmem [shape: f32[1,32], index: 6, kind: input, shape index: {}]   ;;  %s754_s7 = inlined_call_operand.hbm [shape: f32[16,32], index: 7, kind: output, shape index: {}]  }
   0x1   :  { %509 = vmatprep.subr.bf16.mxu0 %v584_v0  ;;  %v521_v1 = vld [vmem:[%s748_s1] sm:$0x1f]   ;;  %v29_v3 = vld [vmem:[%s747_s0 + $0x8] sm:$0xff]  ;;  %511 = vmatprep.mubr.msk.bf16.mxu0 %vm585_vm1, %v584_v0  ;;  %v522_v4 = vld [vmem:[%s750_s3 + $0x74] ss:$8 sps:$4 sm:$0xff]  }
   0x2   :  { %v28_v2 = vld [vmem:[%s747_s0] sm:$0xff]  ;;  %v51_v5 = vsel %vm49_vm0, %v521_v1, 0  ;;  %v524_v7 = vld [vmem:[%s750_s3 + $0x70] ss:$8 sps:$4 sm:$0xff]   ;;  %205 = vmatprep.subr.bf16.mxu1 %v522_v4  ;;  %v528_v10 = vld [vmem:[%s750_s3 + $0x54] ss:$8 sps:$4 sm:$0xff]  }
   0x3   :  { %v30_v6 = vpack.c.bf16 %v29_v3, %v28_v2  ;;  %510 = vmatpush3.bf16.msra.mxu0 %v51_v5  ;;  %v525_v8 = vld [vmem:[%s750_s3 + $0x64] ss:$8 sps:$4 sm:$0xff]   ;;  %206 = vmatpush1.bf16.msra.mxu1 %v524_v7  ;;  %v527_v9 = vld [vmem:[%s750_s3 + $0x60] ss:$8 sps:$4 sm:$0xff]   ;;  %v530_v11 = vld [vmem:[%s750_s3 + $0x50] ss:$8 sps:$4 sm:$0xff]  }
   0x4   :  { %207 = vmatprep.subr.bf16.mxu1 %v525_v8  ;;  %v531_v12 = vld [vmem:[%s750_s3 + $0x44] ss:$8 sps:$4 sm:$0xff]   ;;  %v533_v13 = vld [vmem:[%s750_s3 + $0x40] ss:$8 sps:$4 sm:$0xff]   ;;  %v534_v14 = vld [vmem:[%s750_s3 + $0x34] ss:$8 sps:$4 sm:$0xff]  }
   0x5   :  { %v536_v15 = vld [vmem:[%s750_s3 + $0x30] ss:$8 sps:$4 sm:$0xff]   ;;  %v537_v16 = vld [vmem:[%s750_s3 + $0x24] ss:$8 sps:$4 sm:$0xff]  }
   0x6   :  { %512 = vmatmul.mubr.msk.bf16.vlgmr.msra.gmra.mxu0 %vm45_vm2, %v30_v6 }
   0x7   :  { %208 = vmatpush1.bf16.msra.mxu1 %v527_v9 }
   0x8   :  { %209 = vmatprep.subr.bf16.mxu1 %v528_v10 }
   0xb   :  { %210 = vmatpush1.bf16.msra.mxu1 %v530_v11 }
   0xc   :  { %211 = vmatprep.subr.bf16.mxu1 %v531_v12 }
   0xf   :  { %212 = vmatpush1.bf16.msra.mxu1 %v533_v13 }
  0x10   :  { %213 = vmatprep.subr.bf16.mxu1 %v534_v14 }
  0x13   :  { %214 = vmatpush1.bf16.msra.mxu1 %v536_v15 }
  0x14   :  { %215 = vmatprep.subr.bf16.mxu1 %v537_v16 }
  0x15   :  { %12 = vsyncpa [#allocation3], 0  ;;  %v539_v17 = vld [vmem:[%s750_s3 + $0x20] ss:$8 sps:$4 sm:$0xff]   ;;  %v540_v18 = vld [vmem:[%s750_s3 + $0x14] ss:$8 sps:$4 sm:$0xff]   ;;  %v115_v49 = vlaneseq }
  0x16   :  { %v542_v19 = vld [vmem:[%s750_s3 + $0x10] ss:$8 sps:$4 sm:$0xff]   ;;  %v543_v20 = vld [vmem:[%s750_s3 + $0x4] ss:$8 sps:$4 sm:$0xff]   ;;  %v545_v21 = vld [vmem:[%s750_s3] ss:$8 sps:$4 sm:$0xff]  }
  0x17   :  { %216 = vmatpush1.bf16.msra.mxu1 %v539_v17  ;;  %v586_v22 = vmov 0   ;;  %v546_v23 = vld [vmem:[%s752_s5 + $0x78] sm:$0xff]   ;;  %v548_v25 = vld [vmem:[%s752_s5 + $0x70] sm:$0xff]   ;;  %v550_v27 = vld [vmem:[%s752_s5 + $0x68] sm:$0xff]   ;;  %v116_v50 = vshrl.u32 %v115_v49, 7  ;;  %vm430_vm3 = vcmask 261120  }
  0x18   :  { %217 = vmatprep.subr.bf16.mxu1 %v540_v18  ;;  %237 = vmatprep.mubr.bf16.mxu1 %v586_v22  ;;  %v547_v24 = vld [vmem:[%s752_s5 + $0x38] sm:$0xff]   ;;  %v549_v26 = vld [vmem:[%s752_s5 + $0x30] sm:$0xff]   ;;  %v551_v28 = vld [vmem:[%s752_s5 + $0x28] sm:$0xff]   ;;  %s587_s20 = smov [#allocation2]  }
  0x19   :  { %487 = vmatprep.subr.bf16.mxu0 %v546_v23  ;;  %v552_v29 = vld [vmem:[%s752_s5 + $0x60] sm:$0xff]   ;;  %v554_v31 = vld [vmem:[%s752_s5 + $0x58] sm:$0xff]   ;;  %v556_v43 = vld [vmem:[%s752_s5 + $0x50] sm:$0xff]   ;;  %v121_v51 = vsub.s32 1, %v116_v50  ;;  %v117_v52 = vsub.s32 0, %v116_v50  ;;  %s438_s21 = sshll.u32 %s587_s20, 4  ;;  %s439_s21 = int_to_ptr.vmem [resolvable:$true] %s438_s21 }
  0x1a   :  { %488 = vmatpush3.bf16.msra.mxu0 %v547_v24  ;;  %v553_v30 = vld [vmem:[%s752_s5 + $0x20] sm:$0xff]   ;;  %v555_v32 = vld [vmem:[%s752_s5 + $0x18] sm:$0xff]   ;;  %v557_v44 = vld [vmem:[%s752_s5 + $0x10] sm:$0xff]   ;;  %s562_s22 = scalar_lea.vmem %s439_s21, 256  ;;  %p567_p1 = scmp.lt.s32.totalorder %s439_s21, %s439_s21 }
  0x1b   :  { %218 = vmatpush1.bf16.msra.mxu1 %v542_v19  ;;  %489 = vmatprep.subr.bf16.mxu0 %v548_v25  ;;  %v449_v33 = vld [vmem:[%s749_s2] ss:$0 sm:$0xff]  ;;  %v558_v45 = vld [vmem:[%s752_s5 + $0x48] sm:$0xff]   ;;  %p563_p0 = scmp.ne.s32.totalorder %s439_s21, %s562_s22  ;;  %p568_p2 = scmp.lt.s32.totalorder %s562_s22, %s562_s22 }
  0x1c   :  { %219 = vmatprep.subr.bf16.mxu1 %v543_v20  ;;  %v559_v46 = vld [vmem:[%s752_s5 + $0x8] sm:$0xff]   ;;  %v560_v47 = vld [vmem:[%s752_s5 + $0x40] sm:$0xff]  }
  0x1d   :  { %v561_v48 = vld [vmem:[%s752_s5] sm:$0xff]   ;;  %p569_p3 = por %p568_p2, %p567_p1 }
  0x1e   :  { %490 = vmatpush3.bf16.msra.mxu0 %v549_v26  ;;  %v113_v53 = vld [vmem:[%s751_s4] sm:$0x3] }
  0x1f   :  { %220 = vmatpush1.bf16.msra.mxu1 %v545_v21  ;;  %491 = vmatprep.subr.bf16.mxu0 %v550_v27  ;;  %v122_v55 = vrot.slane %v113_v53, %v121_v51  ;;  %v118_v56 = vrot.slane %v113_v53, %v117_v52  ;;  %v468_v7 = vld [vmem:[%s753_s6] ss:$0 sm:$0xff]  ;;  %p570_p4 = pnand %p569_p3, %p563_p0 }
  0x22   :  { %492 = vmatpush3.bf16.msra.mxu0 %v551_v28 }
  0x23   :  { %493 = vmatprep.subr.bf16.mxu0 %v552_v29 }
  0x26   :  { %494 = vmatpush3.bf16.msra.mxu0 %v553_v30 }
  0x27   :  { %495 = vmatprep.subr.bf16.mxu0 %v554_v31 }
  0x2a   :  { %496 = vmatpush3.bf16.msra.mxu0 %v555_v32 }
  0x2b   :  { %497 = vmatprep.subr.bf16.mxu0 %v556_v43 }
  0x2e   :  { %498 = vmatpush3.bf16.msra.mxu0 %v557_v44 }
  0x2f   :  { %499 = vmatprep.subr.bf16.mxu0 %v558_v45 }
  0x32   :  { %500 = vmatpush3.bf16.msra.mxu0 %v559_v46 }
  0x33   :  { %501 = vmatprep.subr.bf16.mxu0 %v560_v47 }
  0x36   :  { %502 = vmatpush3.bf16.msra.mxu0 %v561_v48 }
  0xc6   :  { %v87_v34 = vpop.f32.mrf.mxu0 }
  0xc7   :  { %v88_v36 = vadd.f32 %v449_v33, %v87_v34 }
  0xc8   :  { %v513_v35 = vpop.f32.mrf.mxu0 }
  0xc9   :  { %v94_v40 = vmax.f32 %v88_v36, 0.0 }
  0xca   :  { %v90_v37 = vpop.f32.mrf.mxu0 }
  0xcb   :  { %v91_v38 = vadd.f32 %v449_v33, %v90_v37 }
  0xcc   :  { %v514_v39 = vpop.f32.mrf.mxu0 }
  0xcd   :  { %v95_v41 = vmax.f32 %v91_v38, 0.0 }
  0xcf   :  { %v96_v42 = vpack.c.bf16 %v95_v41, %v94_v40 }
  0xd1   :  { %238 = vmatmul.mubr.bf16.vlgmr.msra.gmra.mxu1 %v96_v42 }
 0x191   :  { %v239_v54 = vpop.f32.mrf.mxu1 }
 0x192   :  { %v240_v61 = vadd.f32 %v239_v54, %v118_v56 }
 0x193   :  { %v241_v57 = vpop.f32.mrf.mxu1 }
 0x194   :  { %v242_v59 = vadd.f32 %v241_v57, %v122_v55  ;;  %v248_v3 = vmax.f32 %v240_v61, 0.0 }
 0x195   :  { %v243_v58 = vpop.f32.mrf.mxu1 }
 0x196   :  { %v244_v60 = vadd.f32 %v243_v58, %v118_v56  ;;  %v249_v1 = vmax.f32 %v242_v59, 0.0 }
 0x197   :  { %v245_v62 = vpop.f32.mrf.mxu1 }
 0x198   :  { %v246_v63 = vadd.f32 %v245_v62, %v122_v55  ;;  %v250_v0 = vmax.f32 %v244_v60, 0.0 }
 0x19a   :  { %v251_v2 = vmax.f32 %v246_v63, 0.0  ;;  %v252_v5 = vpack.c.bf16 %v250_v0, %v248_v3 }
 0x19c   :  { %v253_v4 = vpack.c.bf16 %v251_v2, %v249_v1 }
 0x19e   :  { %421 = vmatprep.mubr.bf16.mxu0 %v253_v4 }
 0x19f   :  { %422 = vmatmul.mubr.bf16.vlgmr.msra.gmra.mxu0 %v252_v5 }
 0x25f   :  { %v503_v6 = vpop.f32.mrf.mxu0 }
 0x261   :  { %v504_v8 = vpop.f32.mrf.mxu0 }
 0x262   :  { %v505_v9 = vadd.f32 %v504_v8, %v503_v6 }
 0x263   :  { %v506_v10 = vpop.f32.mrf.mxu0 }
 0x264   :  { %v424_v11 = vadd.f32 %v505_v9, %v468_v7 }
 0x265   :  { %v507_v12 = vpop.f32.mrf.mxu0 }
 0x266   :  { %431 = vst.msk [vmem:[#allocation2] sm:$0xff] %vm430_vm3, %v424_v11  ;;  %v508_v13 = vadd.f32 %v507_v12, %v506_v10 }
 0x268   :  { %v427_v14 = vadd.f32 %v508_v13, %v468_v7 }
 0x26a   :  { %432 = vst.msk [vmem:[#allocation2 + $0x8] sm:$0xff] %vm430_vm3, %v427_v14 }
 0x26b   :  { %573 = shalt.err (!%p570_p4)
}
 0x26c   :  { %s588_s6 = smov 128   ;;  %s589_s23 = smov 8  }
 0x26d   :  { %444 = dma.vmem_to_hbm [thread:$0]  %s439_s21, 256, %s754_s7, [#allocation3], %s588_s6, %s588_s6, %s589_s23  }
 0x26e   :  { %582 = dma.done.wait [#allocation3], 256  }
 0x26f   :  { %583 = vsyncadd [#allocation3], 4294967040 }
 0x270   :  { %448 = vsyncpa [#allocation3], 1 }

</bundles_post_ra>
